<compile_context>
chip_gen: v7x
topology: tpu7x:2x2x1
jax: 0.10.0
libtpu: 0.0.40
codegen_flags: <defaults>
</compile_context>

<pallas_src>
import functools

import jax
import jax.numpy as jnp
from jax.experimental import pallas as pl
from jax.experimental.pallas import tpu as pltpu


# --------------------------------------------------------------------------- #
# Kernels
# --------------------------------------------------------------------------- #

def _cln_kernel_sublane(x_ref, g_ref, o_ref, *, eps):
    """Generic path: x_ref (C, tile_s), g_ref (C, 1), channels on sublanes."""
    x = x_ref[...].astype(jnp.float32)
    g = g_ref[...].astype(jnp.float32)
    mean = jnp.mean(x, axis=0, keepdims=True)           # (1, tile_s)
    xc = x - mean                                        # centered, reused
    var = jnp.mean(xc * xc, axis=0, keepdims=True)       # biased var (unbiased=False)
    inv = jax.lax.rsqrt(var + eps)                       # EUP rsqrt, no sqrt+div
    o_ref[...] = (xc * inv * g).astype(o_ref.dtype)


def _cln_kernel_small_c(x_ref, g_ref, o_ref, *, eps):
    """Small/non-aligned-C path: x_ref (C, rows, 128), g_ref (C, 1, 1).

    Spatial occupies both vreg axes; the channel reduction is a short unrolled
    chain of per-vreg VPU adds (C is guaranteed small on this path).
    """
    C = x_ref.shape[0]
    x = x_ref[...].astype(jnp.float32)                   # (C, R, 128)
    g = g_ref[...].astype(jnp.float32)                   # (C, 1, 1)

    s = x[0]
    for c in range(1, C):
        s = s + x[c]
    mean = s * (1.0 / C)                                 # (R, 128)

    xc = x - mean[None]                                  # (C, R, 128)

    ss = xc[0] * xc[0]
    for c in range(1, C):
        ss = ss + xc[c] * xc[c]
    var = ss * (1.0 / C)                                 # (R, 128)

    inv = jax.lax.rsqrt(var + eps)                       # (R, 128)
    o_ref[...] = (xc * inv[None] * g).astype(o_ref.dtype)


# --------------------------------------------------------------------------- #
# Tiling helpers
# --------------------------------------------------------------------------- #

def _divisors(n):
    out = set()
    i = 1
    while i * i <= n:
        if n % i == 0:
            out.add(i)
            out.add(n // i)
        i += 1
    return out


def _vmem_budgets():
    """Return (live-bytes budget for double-buffered in+out blocks, VMEM capacity)."""
    cap = 64 << 20  # conservative default: v7x has 64 MiB VMEM per TensorCore
    try:
        cap = int(pltpu.get_tpu_info().vmem_capacity_bytes)
    except Exception:
        pass
    if cap <= (64 << 20):
        live = 20 << 20   # v7x-class: leave headroom under the 64 MiB VMEM
    else:
        live = 36 << 20   # v5e / v6e: 128 MiB physical VMEM, be more aggressive
    return live, cap


def _pick_tile(n, quantum, bytes_per_unit, live_budget, want_multi_step):
    """Largest tile t (divisor of n that is a multiple of `quantum`, or n itself)
    with 4 * t * bytes_per_unit <= live_budget (in+out, double buffered).
    If `want_multi_step`, prefer tiles that give >= 2 grid steps along this axis
    (so the 'parallel' grid can shard across v7x's two TensorCores)."""
    cands = {d for d in _divisors(n) if d % quantum == 0}
    cands.add(n)
    cands = sorted(cands, reverse=True)
    fitting = [t for t in cands if 4 * t * bytes_per_unit <= live_budget]
    pool = fitting if fitting else [cands[-1]]   # smallest legal tile if nothing fits
    if want_multi_step:
        multi = [t for t in pool if n // t >= 2]
        if multi:
            return multi[0]
    return pool[0]


# --------------------------------------------------------------------------- #
# Wrapper
# --------------------------------------------------------------------------- #

def chan_layer_norm(x, g, eps=1e-5):
    """x: (B, C, H, W), g: (1, C, 1, 1). Returns (B, C, H, W), same dtype as x."""
    B, C, H, W = x.shape
    S = H * W
    itemsize = jnp.dtype(x.dtype).itemsize
    pack = 32 // itemsize                        # sublane packing: 8 f32 / 16 bf16 / 32 int8

    live_budget, vmem_cap = _vmem_budgets()
    want_multi = (B == 1)                        # keep >= 2 grid steps for megacore

    # Small or sublane-unaligned C -> spatial-2D layout (full sublane utilization).
    use_spatial = (S % 128 == 0) and (C % pack != 0) and (C <= 32)

    if use_spatial:
        S128 = S // 128
        bytes_per_unit = C * 128 * itemsize       # bytes per spatial row of the block
        rt = _pick_tile(S128, 8, bytes_per_unit, live_budget, want_multi)
        n_tiles = S128 // rt
        block_bytes = rt * bytes_per_unit

        x_r = x.reshape(B, C, S128, 128)
        g_r = jnp.reshape(g, (1, C, 1, 1))
        kernel = functools.partial(_cln_kernel_small_c, eps=eps)
        in_specs = [
            pl.BlockSpec((None, C, rt, 128), lambda b, t: (b, 0, t, 0)),
            # g is tiny; constant block index keeps it VMEM-resident
            pl.BlockSpec((None, C, 1, 1), lambda b, t: (0, 0, 0, 0)),
        ]
        out_spec = pl.BlockSpec((None, C, rt, 128), lambda b, t: (b, 0, t, 0))
        out_shape = jax.ShapeDtypeStruct((B, C, S128, 128), x.dtype)
    else:
        bytes_per_unit = C * itemsize             # bytes per lane-column of the block
        if S % 128 == 0:
            tile_s = _pick_tile(S, 128, bytes_per_unit, live_budget, want_multi)
        else:
            tile_s = S                            # full-extent lane block is always legal
        n_tiles = S // tile_s
        block_bytes = tile_s * bytes_per_unit

        x_r = x.reshape(B, C, S)
        g_r = jnp.reshape(g, (1, C, 1))
        kernel = functools.partial(_cln_kernel_sublane, eps=eps)
        in_specs = [
            pl.BlockSpec((None, C, tile_s), lambda b, t: (b, 0, t)),
            pl.BlockSpec((None, C, 1), lambda b, t: (0, 0, 0)),
        ]
        out_spec = pl.BlockSpec((None, C, tile_s), lambda b, t: (b, 0, t))
        out_shape = jax.ShapeDtypeStruct((B, C, S), x.dtype)

    # TODO(synk): for extremely large C where even the minimum block exceeds the
    # VMEM budget, add a C-tiled two-pass (sum / sum-of-squares) accumulation path.

    g_bytes = C * jnp.dtype(g.dtype).itemsize
    needed = 4 * block_bytes + g_bytes + (2 << 20)          # dbl-buffered in+out + slack
    vmem_limit = int(min(max(needed, 32 << 20),
                         max(vmem_cap - (8 << 20), 32 << 20)))

    out = pl.pallas_call(
        kernel,
        out_shape=out_shape,
        grid_spec=pltpu.PrefetchScalarGridSpec(
            num_scalar_prefetch=0,
            grid=(B, n_tiles),
            in_specs=in_specs,
            out_specs=out_spec,
        ),
        compiler_params=pltpu.CompilerParams(
            dimension_semantics=("parallel", "parallel"),
            vmem_limit_bytes=vmem_limit,
        ),
    )(x_r, g_r)

    return out.reshape(B, C, H, W)


def chan_layer_norm_ref(x, g, eps=1e-5):
    mean = jnp.mean(x, axis=1, keepdims=True)
    var = jnp.mean((x - mean) ** 2, axis=1, keepdims=True)  # unbiased=False
    return (x - mean) / jnp.sqrt(var + eps) * g


if __name__ == "__main__":
    key = jax.random.PRNGKey(0)
    k1, k2 = jax.random.split(key)

    # 1) Small / non-sublane-aligned C path (C=4 < 8-way f32 sublane pack).
    B, C, H, W = 2, 4, 16, 16
    x = jax.random.normal(k1, (B, C, H, W), dtype=jnp.float32)
    g = jnp.ones((1, C, 1, 1), dtype=jnp.float32)   # nn.Parameter(torch.ones(1, dim, 1, 1))
    out = jax.block_until_ready(chan_layer_norm(x, g, eps=1e-5))
    ref = chan_layer_norm_ref(x, g, eps=1e-5)
    assert out.shape == (B, C, H, W)
    assert jnp.allclose(out, ref, atol=1e-5, rtol=1e-5), "mismatch (small-C path)"

    # 2) Sublane-aligned generic path (C multiple of 8 for f32), non-trivial g.
    B2, C2 = 2, 8
    x2 = jax.random.normal(k2, (B2, C2, H, W), dtype=jnp.float32)
    g2 = (1.0 + 0.1 * jnp.arange(C2, dtype=jnp.float32)).reshape(1, C2, 1, 1)
    out2 = jax.block_until_ready(chan_layer_norm(x2, g2, eps=1e-5))
    ref2 = chan_layer_norm_ref(x2, g2, eps=1e-5)
    assert out2.shape == (B2, C2, H, W)
    assert jnp.allclose(out2, ref2, atol=1e-5, rtol=1e-5), "mismatch (generic path)"

    print("KERNEL_OK")
</pallas_src>

<mosaic_0001>
module attributes {stable_mosaic.version = 11 : i64} {
  func.func @_cln_kernel_small_c(%arg0: i32, %arg1: i32, %arg2: memref<1x4x2x128xf32, #tpu.memory_space<vmem>>, %arg3: memref<1x4x1x1xf32, #tpu.memory_space<vmem>>, %arg4: memref<1x4x2x128xf32, #tpu.memory_space<vmem>>) attributes {dimension_semantics = [#tpu.dimension_semantics<parallel>, #tpu.dimension_semantics<parallel>], iteration_bounds = array<i64: 2, 1>, scalar_prefetch = 0 : i64, scratch_operands = 0 : i64, tpu.core_type = #tpu.core_type<tc>, window_params = [{transform_indices = @transform_0, window_bounds = array<i64: 1, 4, 2, 128>}, {pipeline_mode = #tpu.pipeline_mode<synchronous>, transform_indices = @transform_1, window_bounds = array<i64: 1, 4, 1, 1>}, {transform_indices = @transform_2, window_bounds = array<i64: 1, 4, 2, 128>}]} {
    %c0 = arith.constant 0 : index
    %c0_0 = arith.constant 0 : index
    %c0_1 = arith.constant 0 : index
    %c0_2 = arith.constant 0 : index
    %0 = vector.load %arg2[%c0, %c0_0, %c0_1, %c0_2] : memref<1x4x2x128xf32, #tpu.memory_space<vmem>>, vector<1x4x2x128xf32>
    %1 = vector.shape_cast %0 : vector<1x4x2x128xf32> to vector<4x2x128xf32>
    %c0_3 = arith.constant 0 : index
    %c0_4 = arith.constant 0 : index
    %c0_5 = arith.constant 0 : index
    %c0_6 = arith.constant 0 : index
    %2 = vector.load %arg3[%c0_3, %c0_4, %c0_5, %c0_6] : memref<1x4x1x1xf32, #tpu.memory_space<vmem>>, vector<1x4x1x1xf32>
    %3 = vector.shape_cast %2 : vector<1x4x1x1xf32> to vector<4x1x1xf32>
    %4 = vector.extract_strided_slice %1 {offsets = [0, 0, 0], sizes = [1, 2, 128], strides = [1, 1, 1]} : vector<4x2x128xf32> to vector<1x2x128xf32>
    %5 = vector.shape_cast %4 : vector<1x2x128xf32> to vector<2x128xf32>
    %6 = vector.extract_strided_slice %1 {offsets = [1, 0, 0], sizes = [1, 2, 128], strides = [1, 1, 1]} : vector<4x2x128xf32> to vector<1x2x128xf32>
    %7 = vector.shape_cast %6 : vector<1x2x128xf32> to vector<2x128xf32>
    %8 = arith.addf %5, %7 : vector<2x128xf32>
    %9 = vector.extract_strided_slice %1 {offsets = [2, 0, 0], sizes = [1, 2, 128], strides = [1, 1, 1]} : vector<4x2x128xf32> to vector<1x2x128xf32>
    %10 = vector.shape_cast %9 : vector<1x2x128xf32> to vector<2x128xf32>
    %11 = arith.addf %8, %10 : vector<2x128xf32>
    %12 = vector.extract_strided_slice %1 {offsets = [3, 0, 0], sizes = [1, 2, 128], strides = [1, 1, 1]} : vector<4x2x128xf32> to vector<1x2x128xf32>
    %13 = vector.shape_cast %12 : vector<1x2x128xf32> to vector<2x128xf32>
    %14 = arith.addf %11, %13 : vector<2x128xf32>
    %cst = arith.constant 2.500000e-01 : f32
    %15 = vector.broadcast %cst : f32 to vector<2x128xf32>
    %16 = arith.mulf %14, %15 : vector<2x128xf32>
    %17 = vector.shape_cast %16 : vector<2x128xf32> to vector<1x2x128xf32>
    %18 = vector.broadcast %17 : vector<1x2x128xf32> to vector<4x2x128xf32>
    %19 = arith.subf %1, %18 : vector<4x2x128xf32>
    %20 = vector.extract_strided_slice %19 {offsets = [0, 0, 0], sizes = [1, 2, 128], strides = [1, 1, 1]} : vector<4x2x128xf32> to vector<1x2x128xf32>
    %21 = vector.shape_cast %20 : vector<1x2x128xf32> to vector<2x128xf32>
    %22 = vector.extract_strided_slice %19 {offsets = [0, 0, 0], sizes = [1, 2, 128], strides = [1, 1, 1]} : vector<4x2x128xf32> to vector<1x2x128xf32>
    %23 = vector.shape_cast %22 : vector<1x2x128xf32> to vector<2x128xf32>
    %24 = arith.mulf %21, %23 : vector<2x128xf32>
    %25 = vector.extract_strided_slice %19 {offsets = [1, 0, 0], sizes = [1, 2, 128], strides = [1, 1, 1]} : vector<4x2x128xf32> to vector<1x2x128xf32>
    %26 = vector.shape_cast %25 : vector<1x2x128xf32> to vector<2x128xf32>
    %27 = vector.extract_strided_slice %19 {offsets = [1, 0, 0], sizes = [1, 2, 128], strides = [1, 1, 1]} : vector<4x2x128xf32> to vector<1x2x128xf32>
    %28 = vector.shape_cast %27 : vector<1x2x128xf32> to vector<2x128xf32>
    %29 = arith.mulf %26, %28 : vector<2x128xf32>
    %30 = arith.addf %24, %29 : vector<2x128xf32>
    %31 = vector.extract_strided_slice %19 {offsets = [2, 0, 0], sizes = [1, 2, 128], strides = [1, 1, 1]} : vector<4x2x128xf32> to vector<1x2x128xf32>
    %32 = vector.shape_cast %31 : vector<1x2x128xf32> to vector<2x128xf32>
    %33 = vector.extract_strided_slice %19 {offsets = [2, 0, 0], sizes = [1, 2, 128], strides = [1, 1, 1]} : vector<4x2x128xf32> to vector<1x2x128xf32>
    %34 = vector.shape_cast %33 : vector<1x2x128xf32> to vector<2x128xf32>
    %35 = arith.mulf %32, %34 : vector<2x128xf32>
    %36 = arith.addf %30, %35 : vector<2x128xf32>
    %37 = vector.extract_strided_slice %19 {offsets = [3, 0, 0], sizes = [1, 2, 128], strides = [1, 1, 1]} : vector<4x2x128xf32> to vector<1x2x128xf32>
    %38 = vector.shape_cast %37 : vector<1x2x128xf32> to vector<2x128xf32>
    %39 = vector.extract_strided_slice %19 {offsets = [3, 0, 0], sizes = [1, 2, 128], strides = [1, 1, 1]} : vector<4x2x128xf32> to vector<1x2x128xf32>
    %40 = vector.shape_cast %39 : vector<1x2x128xf32> to vector<2x128xf32>
    %41 = arith.mulf %38, %40 : vector<2x128xf32>
    %42 = arith.addf %36, %41 : vector<2x128xf32>
    %cst_7 = arith.constant 2.500000e-01 : f32
    %43 = vector.broadcast %cst_7 : f32 to vector<2x128xf32>
    %44 = arith.mulf %42, %43 : vector<2x128xf32>
    %cst_8 = arith.constant 9.99999974E-6 : f32
    %45 = vector.broadcast %cst_8 : f32 to vector<2x128xf32>
    %46 = arith.addf %44, %45 : vector<2x128xf32>
    %47 = math.rsqrt %46 : vector<2x128xf32>
    %48 = vector.shape_cast %47 : vector<2x128xf32> to vector<1x2x128xf32>
    %49 = vector.broadcast %48 : vector<1x2x128xf32> to vector<4x2x128xf32>
    %50 = arith.mulf %19, %49 : vector<4x2x128xf32>
    %51 = vector.broadcast %3 : vector<4x1x1xf32> to vector<4x2x128xf32>
    %52 = arith.mulf %50, %51 : vector<4x2x128xf32>
    %c0_9 = arith.constant 0 : index
    %c0_10 = arith.constant 0 : index
    %c0_11 = arith.constant 0 : index
    %c0_12 = arith.constant 0 : index
    %53 = vector.load %arg4[%c0_9, %c0_10, %c0_11, %c0_12] : memref<1x4x2x128xf32, #tpu.memory_space<vmem>>, vector<1x4x2x128xf32>
    %54 = vector.shape_cast %53 : vector<1x4x2x128xf32> to vector<4x2x128xf32>
    %55 = vector.shape_cast %52 : vector<4x2x128xf32> to vector<1x4x2x128xf32>
    tpu.vector_store %arg4[%c0_9, %c0_10, %c0_11, %c0_12], %55 {strides = array<i32>} : memref<1x4x2x128xf32, #tpu.memory_space<vmem>>, vector<1x4x2x128xf32>,
    return
  }
  func.func @transform_0(%arg0: i32, %arg1: i32) -> (i32, i32, i32, i32) {
    %c0_i32 = arith.constant 0 : i32
    %c0_i32_0 = arith.constant 0 : i32
    %c0_i32_1 = arith.constant 0 : i32
    return %arg0, %c0_i32, %arg1, %c0_i32_0 : i32, i32, i32, i32
  }
  func.func @transform_1(%arg0: i32, %arg1: i32) -> (i32, i32, i32, i32) {
    %c0_i32 = arith.constant 0 : i32
    %c0_i32_0 = arith.constant 0 : i32
    %c0_i32_1 = arith.constant 0 : i32
    %c0_i32_2 = arith.constant 0 : i32
    %c0_i32_3 = arith.constant 0 : i32
    return %c0_i32, %c0_i32_0, %c0_i32_1, %c0_i32_2 : i32, i32, i32, i32
  }
  func.func @transform_2(%arg0: i32, %arg1: i32) -> (i32, i32, i32, i32) {
    %c0_i32 = arith.constant 0 : i32
    %c0_i32_0 = arith.constant 0 : i32
    %c0_i32_1 = arith.constant 0 : i32
    return %arg0, %c0_i32, %arg1, %c0_i32_0 : i32, i32, i32, i32
  }
}

</mosaic_0001>

<bundles_post_ra>
// kernel: tpu_custom_call.1
= control target key start
LH: loop header
LB: loop body
LE: loop exit
PB: predicated region body
PF: predicated region fallthrough
CT: control target
= control target key end

     0   :  { %7 = vsyncpa [#allocation3], 0  ;;  %s772_s0 = inlined_call_operand.hbm [shape: f32[2,4,2,128], index: 0, kind: input, shape index: {}]   ;;  %s773_s1 = inlined_call_operand.vmem [shape: f32[1,4,1,1], index: 1, kind: input, shape index: {}]   ;;  %s774_s2 = inlined_call_operand.hbm [shape: f32[2,4,2,128], index: 2, kind: output, shape index: {}]  }
   0x1   :  { %9 = vsyncpa [#allocation3 + $0x1], 0 }
   0x2   :  { %10 = vsyncpa [#allocation4], 0 }
   0x3   :  { %12 = vsyncpa [#allocation4 + $0x1], 0  ;;  %s581_s9 = smov 0   ;;  %s583_s10 = smov 0  }
   0x4   :  { %s585_s11 = smov 0   ;;  %s587_s12 = smov 0  }
   0x5   :  { %s589_s13 = smov 0   ;;  %s591_s14 = smov 0  }
   0x6 LB: > { %s353_s15 = sadd.s32 4294967295, %s557_s14   ;;  %s354_s16 = sadd.s32 4294967294, %s557_s14   ;;  %s557_s14 = sphi %s591_s14, %s18_s14   ;;  %s553_s13 = sphi %s589_s13, %s789_s13   ;;  %s549_s12 = sphi %s587_s12, %s788_s12   ;;  %s545_s11 = sphi %s585_s11, %s787_s11   ;;  %s541_s10 = sphi %s583_s10, %s786_s10   ;;  %s537_s9 = sphi %s581_s9, %s785_s9  }
   0x7   : > { %s30_s17 = sadd.s32 1, %s553_s13  ;;  %s39_s18 = sadd.s32 1, %s545_s11 }
   0x8   : > { %p32_p0 = scmp.ge.s32.totalorder %s30_s17, 2  ;;  %p46_p1 = scmp.ne.s32.totalorder %s545_s11, %s541_s10 }
   0x9   : > { %p47_p2 = scmp.eq.s32.totalorder %s557_s14, 0  ;;  %p52_p3 = scmp.ne.s32.totalorder %s541_s10, %s537_s9 }
   0xa   : > { %s791_s17 = smov (%p32_p0, %s30_s17), 0  ;;  %p53_p5 = scmp.eq.s32.totalorder %s353_s15, 0 }
   0xb   : > { %p622_p4 = por %p47_p2, %p46_p1  ;;  %s34_s20 = ssub.s32 %s553_s13, %s791_s17 }
   0xc   : > { %p99_p6 = scmp.eq.s32.totalorder %s353_s15, 1  ;;  %p37_p7 = scmp.eq.s32.totalorder %s34_s20, 0 }
   0xd   : > { %p628_p8 = por %p53_p5, %p52_p3  ;;  %p105_p10 = scmp.eq.s32.totalorder %s354_s16, 1 }
   0xe   : > { %p632_p9 = por %p99_p6, %p46_p1  ;;  %p386_p13 = scmp.lt.s32.totalorder %s557_s14, 2 }
   0xf   : > { %s637_s23 = scalar_select %p37_p7, %s545_s11, %s39_s18  }
  0x10   : > { %s778_s22 = scalar_select %p632_p9, 1, 0 }
  0x11   : > { %p639_p11 = por %p105_p10, %p52_p3  ;;  %s128_s25 = sand.u32 1, %s545_s11  }
  0x12   : > { %s357_s26 = sshll.u32 %s128_s25, 3  ;;  %s372_s27 = sshll.u32 %s553_s13, 7 }
  0x13   : > { %s779_s24 = scalar_select %p639_p11, 1, 0 }
  0x14   : > { %s650_s30 = scalar_lea.hbm %s772_s0, %s372_s27  ;;  %s132_s3 = scalar_lea.vmem [#allocation2], %s357_s26 }
  0x15   : > { %s140_s4 = sshll.u32 %s132_s3, 4  ;;  %p656_p0 = pnand %p386_p13, %p622_p4  ;;  %s652_s4 = int_to_ptr.vmem [resolvable:$true] %s140_s4 }
  0x16   : > { %s661_s6 = scalar_lea.sflag [#allocation3], %s128_s25  ;;  %s445_s7 = scalar_lea.hbm %s650_s30, 128 }
  0x17   : > { %p446_p2 = scmp.ne.s32.totalorder %s650_s30, %s445_s7  ;;  %p447_p3 = pneg %p656_p0 }
  0x18   : > { %s450_s16 = scalar_lea.hbm %s772_s0, 256  ;;  %p451_p4 = scmp.lt.u32.totalorder %s650_s30, %s772_s0 }
  0x19   : > { %p448_p5 = pnand %p447_p3, %p446_p2  ;;  %p452_p7 = scmp.lt.u32.totalorder %s450_s16, %s445_s7 }
  0x1a   : > { %p454_p13 = scmp.lt.u32.totalorder %s445_s7, %s650_s30 }
  0x1b   : > { %p449_p6 = pneg %p448_p5  ;;  %p453_p10 = por %p452_p7, %p451_p4 }
  0x1d   : > { %p455_p12 = por %p454_p13, %p453_p10 }
  0x1f   : > { %p456_p1 = pnand %p455_p12, %p449_p6 }
  0x21   : > { %459 = shalt.err (!%p456_p1)
}
  0x22   : > { %s460_s20 = scalar_lea.vmem %s652_s4, 128  ;;  %s559_s25 = smov [#allocation2]  }
  0x23   : > { %p461_p2 = scmp.ne.s32.totalorder %s652_s4, %s460_s20  ;;  %s465_s26 = sshll.u32 %s559_s25, 4  ;;  %s466_s26 = int_to_ptr.vmem [resolvable:$false] %s465_s26 }
  0x24   : > { %s467_s27 = scalar_lea.vmem %s466_s26, 256  ;;  %p468_p9 = scmp.lt.s32.totalorder %s652_s4, %s466_s26 }
  0x25   : > { %p463_p5 = pnand %p461_p2, %p447_p3  ;;  %p469_p4 = scmp.lt.s32.totalorder %s467_s27, %s460_s20 }
  0x27   : > { %p464_p11 = pneg %p463_p5  ;;  %p470_p7 = por %p469_p4, %p468_p9 }
  0x29   : > { %p471_p10 = pnand %p470_p7, %p464_p11 }
  0x2b   : > { %474 = shalt.err (!%p471_p10)
}
  0x2c   : > { %s560_s28 = smov 32   ;;  %s561_s29 = smov 2  }
  0x2d   : > { %381 = dma.hbm_to_vmem [thread:$0]  (!%p656_p0), %s650_s30, 128, %s652_s4, %s661_s6, %s560_s28, %s560_s28, %s561_s29  }
  0x2e   : > { %p148_p12 = scmp.lt.s32.totalorder %s557_s14, 3  ;;  %p781_p1 = scmp.ge.s32.totalorder %s557_s14, 1 }
  0x30   : > { %p149_p3 = pnand %p781_p1, %p148_p12 }
  0x31   : > { %s693_s3 = sand.u32 (!%p149_p3), 1, %s541_s10  }
  0x32   : > { %152 = sbr.rel (%p149_p3) target bundleno = 209 (0xd1), region = 28  ;;  %s361_s7 = sshll.u32 (!%p149_p3), %s693_s3, 3 }
  0x33   : > { %s155_s8 = scalar_lea.sflag (!%p149_p3), [#allocation3], %s693_s3  ;;  %s158_s15 = scalar_lea.vmem (!%p149_p3), [#allocation2], %s361_s7 }
  0x39   : > { %528 = dma.done.wait (%p628_p8), %s155_s8, 128  }
  0x3a   : > { %530 = vsyncadd (%p628_p8), %s155_s8, 4294967168  ;;  %v562_v0 = vmov 0   ;;  %v365_v1 = vld [vmem:[%s773_s1 + $0x2] ss:$0 sm:$0xff]  ;;  %v363_v2 = vld [vmem:[%s773_s1] ss:$0 sm:$0xff] }
  0x3b   : > { %442 = vset.pattern.permute.xlu1 %v562_v0  ;;  %441 = vset.pattern.permute.xlu0 %v562_v0  ;;  %v366_v3 = vld [vmem:[%s773_s1 + $0x3] ss:$0 sm:$0xff]  ;;  %v364_v4 = vld [vmem:[%s773_s1 + $0x1] ss:$0 sm:$0xff]  ;;  %v181_v8 = vld [vmem:[%s158_s15 + $0x4] sm:$0x3] }
  0x3c   : > { %238 = vperm.xlu1 %442, %v365_v1   ;;  %230 = vperm.xlu0 %441, %v363_v2   ;;  %v179_v5 = vld [vmem:[%s158_s15] sm:$0x3]  ;;  %v180_v6 = vld [vmem:[%s158_s15 + $0x2] sm:$0x3]  ;;  %v182_v10 = vld [vmem:[%s158_s15 + $0x6] sm:$0x3] }
  0x3d   : > { %v187_v7 = vadd.f32 %v180_v6, %v179_v5  ;;  %s178_s20 = scalar_lea.vmem [#allocation5], %s361_s7  ;;  %s373_s26 = sshll.u32 %s549_s12, 7 }
  0x3e   : > { %s268_s25 = sshll.u32 %s178_s20, 4  ;;  %s723_s29 = scalar_lea.hbm %s774_s2, %s373_s26  ;;  %s718_s25 = int_to_ptr.vmem [resolvable:$true] %s268_s25 }
  0x3f   : > { %v188_v9 = vadd.f32 %v187_v7, %v181_v8  ;;  %s254_s7 = scalar_lea.sflag [#allocation4], %s693_s3  ;;  %s475_s12 = scalar_lea.vmem %s718_s25, 128 }
  0x40   : > { %242 = vperm.xlu1 %442, %v366_v3   ;;  %234 = vperm.xlu0 %441, %v364_v4   ;;  %p476_p8 = scmp.ne.s32.totalorder %s718_s25, %s475_s12  ;;  %p782_p9 = scmp.ne.s32.totalorder %s778_s22, 0 }
  0x41   : > { %v189_v11 = vadd.f32 %v188_v9, %v182_v10  ;;  %s563_s8 = smov [#allocation5]  }
  0x42   : > { %p477_p11 = pnand %p476_p8, %p782_p9  ;;  %s479_s15 = sshll.u32 %s563_s8, 4  ;;  %s480_s15 = int_to_ptr.vmem [resolvable:$false] %s479_s15 }
  0x43   : > { %v190_v12 = vmul.f32 0.25, %v189_v11  ;;  %s481_s30 = scalar_lea.vmem %s480_s15, 256  ;;  %p482_p6 = scmp.lt.s32.totalorder %s718_s25, %s480_s15 }
  0x44   : > { %p478_p0 = pneg %p477_p11  ;;  %p483_p13 = scmp.lt.s32.totalorder %s481_s30, %s475_s12 }
  0x45   : > { %v191_v13 = vsub.f32 %v179_v5, %v190_v12  ;;  %v192_v14 = vsub.f32 %v180_v6, %v190_v12  ;;  %v193_v15 = vsub.f32 %v181_v8, %v190_v12  ;;  %v194_v18 = vsub.f32 %v182_v10, %v190_v12 }
  0x46   : > { %p484_p2 = por %p483_p13, %p482_p6 }
  0x47   : > { %v195_v16 = vmul.f32 %v191_v13, %v191_v13  ;;  %v196_v17 = vmul.f32 %v192_v14, %v192_v14  ;;  %v198_v20 = vmul.f32 %v193_v15, %v193_v15  ;;  %v200_v22 = vmul.f32 %v194_v18, %v194_v18 }
  0x48   : > { %p485_p5 = pnand %p484_p2, %p478_p0 }
  0x49   : > { %v197_v19 = vadd.f32 %v196_v17, %v195_v16 }
  0x4b   : > { %v199_v21 = vadd.f32 %v198_v20, %v197_v19 }
  0x4d   : > { %v201_v23 = vadd.f32 %v200_v22, %v199_v21 }
  0x4f   : > { %v202_v24 = vmul.f32 0.25, %v201_v23 }
  0x51   : > { %v203_v25 = vadd.f32 1e-05, %v202_v24 }
  0x53   : > { %443 = vrsqrt.f32 %v203_v25 }
  0x5d   : > { %v444_v26 = vpop.eup %443 }
  0x5e   : > { %v207_v27 = vmul.f32 %v444_v26, %v193_v15  ;;  %v205_v28 = vmul.f32 %v444_v26, %v191_v13  ;;  %v208_v33 = vmul.f32 %v444_v26, %v194_v18  ;;  %v206_v34 = vmul.f32 %v444_v26, %v192_v14 }
  0xbb   : > { %v239_v29 = vpop.permute.xlu1 %238  ;;  %v231_v30 = vpop.permute.xlu0 %230 }
  0xbc   : > { %v247_v31 = vmul.f32 %v239_v29, %v207_v27  ;;  %v245_v32 = vmul.f32 %v231_v30, %v205_v28 }
  0xbe   : > { %251 = vst [vmem:[%s178_s20 + $0x4] sm:$0x3] %v247_v31  ;;  %249 = vst [vmem:[%s178_s20] sm:$0x3] %v245_v32 }
  0xbf   : > { %v243_v35 = vpop.permute.xlu1 %242  ;;  %v235_v36 = vpop.permute.xlu0 %234 }
  0xc0   : > { %v248_v37 = vmul.f32 %v243_v35, %v208_v33  ;;  %v246_v38 = vmul.f32 %v235_v36, %v206_v34 }
  0xc2   : > { %252 = vst [vmem:[%s178_s20 + $0x6] sm:$0x3] %v248_v37  ;;  %250 = vst [vmem:[%s178_s20 + $0x2] sm:$0x3] %v246_v38 }
  0xc3   : > { %488 = shalt.err (!%p485_p5)
}
  0xc4   : > { %s489_s4 = scalar_lea.hbm %s723_s29, 128  ;;  %s493_s16 = scalar_lea.hbm %s774_s2, 256 }
  0xc5   : > { %p490_p4 = scmp.ne.s32.totalorder %s723_s29, %s489_s4  ;;  %p494_p12 = scmp.lt.u32.totalorder %s723_s29, %s774_s2 }
  0xc6   : > { %p495_p1 = scmp.lt.u32.totalorder %s493_s16, %s489_s4  ;;  %p497_p8 = scmp.lt.u32.totalorder %s489_s4, %s723_s29 }
  0xc7   : > { %p491_p7 = pnand %p490_p4, %p782_p9 }
  0xc8   : > { %p496_p3 = por %p495_p1, %p494_p12 }
  0xc9   : > { %p492_p10 = pneg %p491_p7 }
  0xca   : > { %p498_p11 = por %p497_p8, %p496_p3 }
  0xcc   : > { %p499_p0 = pnand %p498_p11, %p492_p10 }
  0xce   : > { %502 = shalt.err (!%p499_p0)
}
  0xcf   : > { %s564_s21 = smov 32   ;;  %s565_s20 = smov 2  }
  0xd0   : > { %376 = dma.vmem_to_hbm [thread:$0]  (%p782_p9), %s718_s25, 128, %s723_s29, %s254_s7, %s564_s21, %s564_s21, %s565_s20  }
  0xd1 PF: > { %s283_s26 = sand.u32 1, %s537_s9   ;;  %p783_p6 = scmp.ne.s32.totalorder %s779_s24, 0 }
  0xd2   : > { %p784_p13 = scmp.ge.s32.totalorder %s557_s14, 2  ;;  %s284_s27 = scalar_lea.sflag [#allocation4], %s283_s26 }
  0xd4   : > { %p383_p2 = pnand %p784_p13, %p783_p6 }
  0xd6   : > { %532 = dma.done.wait (!%p383_p2), %s284_s27, 128  }
  0xd7   : > { %534 = vsyncadd (!%p383_p2), %s284_s27, 4294967168  ;;  %s18_s14 = sadd.s32 1, %s557_s14   ;;  %s785_s9 = smov %s541_s10 }
  0xd8   : > { %p15_p5 = scmp.ge.s32.totalorder %s18_s14, 4   ;;  %s786_s10 = smov %s545_s11 }
  0xd9   : > { %s787_s11 = smov %s637_s23  ;;  %s788_s12 = smov %s553_s13 }
  0xda   : > { %s789_s13 = smov %s791_s17  ;;  %17 = sbr.rel (!%p15_p5) target bundleno = 6 (0x6), region = 73 }
  0xe1   :  { %289 = vsyncpa [#allocation3], 1 }
  0xe2   :  { %291 = vsyncpa [#allocation3 + $0x1], 1 }
  0xe3   :  { %292 = vsyncpa [#allocation4], 1 }
  0xe4   :  { %294 = vsyncpa [#allocation4 + $0x1], 1 }

</bundles_post_ra>
